<compile_context>
chip_gen: v7x
topology: tpu7x:2x2x1
jax: 0.10.0
libtpu: 0.0.40
codegen_flags: <defaults>
</compile_context>

<pallas_src>
import jax
import jax.numpy as jnp
from jax.experimental import pallas as pl
from jax.experimental.pallas import tpu as pltpu


def _l_grad_kernel(a_ref, b_ref, f_ref, o_ref):
    """Refs are (N, H, W) channel-0 planes (channel squeezed by the BlockSpec)."""
    n = a_ref.shape[0]
    h = a_ref.shape[1]
    w = a_ref.shape[2]

    # One fused slab: (3N, H, W) f32 in VMEM (concat along the major axis).
    x = jnp.concatenate(
        [a_ref[...], b_ref[...], f_ref[...]], axis=0).astype(jnp.float32)

    row = jax.lax.broadcasted_iota(jnp.int32, x.shape, 1)
    col = jax.lax.broadcasted_iota(jnp.int32, x.shape, 2)

    def shift(v, off, axis, idx, size):
        # result[..., i, ...] = v[..., i + off, ...], zero outside [0, size).
        # pltpu.roll follows jnp.roll semantics: out[i] = v[(i - shift) % size],
        # so shift = -off; the mask kills the single wrapped row/column, which
        # reproduces the conv's zero padding exactly.
        rolled = pltpu.roll(v, shift=(-off) % size, axis=axis)
        keep = jnp.logical_and(idx + off >= 0, idx + off < size)
        return jnp.where(keep, rolled, 0.0)

    # Vertical (sublane) 3-tap pass.
    up = shift(x, -1, 1, row, h)                # x[i-1, j]
    dn = shift(x, +1, 1, row, h)                # x[i+1, j]
    v_sm = up + 2.0 * x + dn                    # [1, 2, 1]  -> feeds Sobel-x
    v_df = up - dn                              # [1, 0,-1]  -> feeds Sobel-y

    # Horizontal (lane) 3-tap pass.
    gx = shift(v_sm, +1, 2, col, w) - shift(v_sm, -1, 2, col, w)                # [-1, 0, 1]
    gy = shift(v_df, -1, 2, col, w) + 2.0 * v_df + shift(v_df, +1, 2, col, w)   # [ 1, 2, 1]

    g = jnp.abs(gx) + jnp.abs(gy)               # (3N, H, W)
    g_a = g[:n]
    g_b = g[n:2 * n]
    g_f = g[2 * n:]

    # Written exactly once: no cross-step accumulation, no race.
    o_ref[0, 0] = jnp.sum(jnp.abs(g_f - jnp.maximum(g_a, g_b)))


def l_grad_pallas(image_A, image_B, image_F):
    """Pallas implementation of L_Grad.forward (NCHW inputs)."""
    N, C, H, W = image_A.shape

    # Channel 0 ("Y") is selected by the BlockSpec itself (squeezed channel
    # dim): no wrapper-side slice, so no extra HBM pass before the kernel.
    in_spec = pl.BlockSpec((N, None, H, W), lambda i: (0, 0, 0, 0))

    # NOTE: whole-problem single step is right for these sizes (~3 KB).  For
    # large H, W: tile over (N, row-blocks) with a 1-row halo, mark N
    # "parallel" (v7x has 2 TCs/chip), and set vmem_limit_bytes explicitly
    # (16 MiB scoped default on v5e, 32 MiB on v6e/v7x, 64 MiB physical v7x).
    total = pl.pallas_call(
        _l_grad_kernel,
        out_shape=jax.ShapeDtypeStruct((1, 1), jnp.float32),
        grid=(1,),
        in_specs=[in_spec, in_spec, in_spec],
        out_specs=pl.BlockSpec(memory_space=pltpu.SMEM),
        compiler_params=pltpu.CompilerParams(
            dimension_semantics=("arbitrary",)),
    )(image_A, image_B, image_F)

    # F.l1_loss default reduction='mean' over all N*1*H*W elements.
    return total[0, 0] / jnp.float32(N * H * W)


def l_grad_reference(image_A, image_B, image_F):
    """Pure-JAX reference for correctness checking."""
    kx = jnp.array([[-1, 0, 1], [-2, 0, 2], [-1, 0, 1]], jnp.float32)
    ky = jnp.array([[1, 2, 1], [0, 0, 0], [-1, -2, -1]], jnp.float32)
    w = jnp.stack([kx, ky])[:, None, :, :]  # (2, 1, 3, 3) OIHW

    def sob(x_nchw):
        x = x_nchw[:, :1, :, :].astype(jnp.float32)
        out = jax.lax.conv_general_dilated(
            x, w, window_strides=(1, 1), padding="SAME",
            dimension_numbers=("NCHW", "OIHW", "NCHW"))
        return jnp.abs(out[:, 0:1]) + jnp.abs(out[:, 1:2])

    g_a = sob(image_A)
    g_b = sob(image_B)
    g_f = sob(image_F)
    g_joint = jnp.maximum(g_a, g_b)
    return jnp.mean(jnp.abs(g_f - g_joint))


if __name__ == "__main__":
    key = jax.random.PRNGKey(0)
    kA, kB, kF = jax.random.split(key, 3)

    N, C, H, W = 2, 4, 16, 16
    image_A = jax.random.uniform(kA, (N, C, H, W), dtype=jnp.float32)
    image_B = jax.random.uniform(kB, (N, C, H, W), dtype=jnp.float32)
    image_F = jax.random.uniform(kF, (N, C, H, W), dtype=jnp.float32)

    loss = l_grad_pallas(image_A, image_B, image_F)
    loss = jax.block_until_ready(loss)

    ref = jax.block_until_ready(l_grad_reference(image_A, image_B, image_F))
    assert jnp.allclose(loss, ref, rtol=1e-4, atol=1e-5), (loss, ref)

    print("KERNEL_OK")
</pallas_src>

<mosaic_0001>
module attributes {stable_mosaic.version = 11 : i64} {
  func.func @_l_grad_kernel(%arg0: i32, %arg1: memref<2x1x16x16xf32, #tpu.memory_space<vmem>>, %arg2: memref<2x1x16x16xf32, #tpu.memory_space<vmem>>, %arg3: memref<2x1x16x16xf32, #tpu.memory_space<vmem>>, %arg4: memref<1x1xf32, #tpu.memory_space<smem>>) attributes {dimension_semantics = [#tpu.dimension_semantics<arbitrary>], iteration_bounds = array<i64: 1>, scalar_prefetch = 0 : i64, scratch_operands = 0 : i64, tpu.core_type = #tpu.core_type<tc>, window_params = [{transform_indices = @transform_0, window_bounds = array<i64: 2, 1, 16, 16>}, {transform_indices = @transform_1, window_bounds = array<i64: 2, 1, 16, 16>}, {transform_indices = @transform_2, window_bounds = array<i64: 2, 1, 16, 16>}, {transform_indices = @transform_3, window_bounds = array<i64: 1, 1>}]} {
    %c0 = arith.constant 0 : index
    %c0_0 = arith.constant 0 : index
    %c0_1 = arith.constant 0 : index
    %c0_2 = arith.constant 0 : index
    %0 = vector.load %arg1[%c0, %c0_0, %c0_1, %c0_2] : memref<2x1x16x16xf32, #tpu.memory_space<vmem>>, vector<2x1x16x16xf32>
    %1 = vector.shape_cast %0 : vector<2x1x16x16xf32> to vector<2x16x16xf32>
    %c0_3 = arith.constant 0 : index
    %c0_4 = arith.constant 0 : index
    %c0_5 = arith.constant 0 : index
    %c0_6 = arith.constant 0 : index
    %2 = vector.load %arg2[%c0_3, %c0_4, %c0_5, %c0_6] : memref<2x1x16x16xf32, #tpu.memory_space<vmem>>, vector<2x1x16x16xf32>
    %3 = vector.shape_cast %2 : vector<2x1x16x16xf32> to vector<2x16x16xf32>
    %c0_7 = arith.constant 0 : index
    %c0_8 = arith.constant 0 : index
    %c0_9 = arith.constant 0 : index
    %c0_10 = arith.constant 0 : index
    %4 = vector.load %arg3[%c0_7, %c0_8, %c0_9, %c0_10] : memref<2x1x16x16xf32, #tpu.memory_space<vmem>>, vector<2x1x16x16xf32>
    %5 = vector.shape_cast %4 : vector<2x1x16x16xf32> to vector<2x16x16xf32>
    %6 = tpu.concatenate %1, %3, %5 in 0 : vector<2x16x16xf32>, vector<2x16x16xf32>, vector<2x16x16xf32> -> vector<6x16x16xf32>
    %7 = tpu.iota {dimensions = array<i32: 1>} : vector<6x16x16xi32>
    %8 = tpu.iota {dimensions = array<i32: 2>} : vector<6x16x16xi32>
    %c1_i32 = arith.constant 1 : i32
    %9 = tpu.dynamic_rotate %6 by %c1_i32 dim 1 : vector<6x16x16xf32>, i32 -> vector<6x16x16xf32>
    %c-1_i32 = arith.constant -1 : i32
    %10 = vector.broadcast %c-1_i32 : i32 to vector<6x16x16xi32>
    %11 = arith.addi %7, %10 : vector<6x16x16xi32>
    %c0_i32 = arith.constant 0 : i32
    %12 = vector.broadcast %c0_i32 : i32 to vector<6x16x16xi32>
    %13 = arith.cmpi sge, %11, %12 : vector<6x16x16xi32>
    %c-1_i32_11 = arith.constant -1 : i32
    %14 = vector.broadcast %c-1_i32_11 : i32 to vector<6x16x16xi32>
    %15 = arith.addi %7, %14 : vector<6x16x16xi32>
    %c16_i32 = arith.constant 16 : i32
    %16 = vector.broadcast %c16_i32 : i32 to vector<6x16x16xi32>
    %17 = arith.cmpi slt, %15, %16 : vector<6x16x16xi32>
    %18 = arith.andi %13, %17 : vector<6x16x16xi1>
    %cst = arith.constant 0.000000e+00 : f32
    %19 = vector.broadcast %cst : f32 to vector<6x16x16xf32>
    %20 = arith.select %18, %9, %19 : vector<6x16x16xi1>, vector<6x16x16xf32>
    %c15_i32 = arith.constant 15 : i32
    %21 = tpu.dynamic_rotate %6 by %c15_i32 dim 1 : vector<6x16x16xf32>, i32 -> vector<6x16x16xf32>
    %c1_i32_12 = arith.constant 1 : i32
    %22 = vector.broadcast %c1_i32_12 : i32 to vector<6x16x16xi32>
    %23 = arith.addi %7, %22 : vector<6x16x16xi32>
    %c0_i32_13 = arith.constant 0 : i32
    %24 = vector.broadcast %c0_i32_13 : i32 to vector<6x16x16xi32>
    %25 = arith.cmpi sge, %23, %24 : vector<6x16x16xi32>
    %c1_i32_14 = arith.constant 1 : i32
    %26 = vector.broadcast %c1_i32_14 : i32 to vector<6x16x16xi32>
    %27 = arith.addi %7, %26 : vector<6x16x16xi32>
    %c16_i32_15 = arith.constant 16 : i32
    %28 = vector.broadcast %c16_i32_15 : i32 to vector<6x16x16xi32>
    %29 = arith.cmpi slt, %27, %28 : vector<6x16x16xi32>
    %30 = arith.andi %25, %29 : vector<6x16x16xi1>
    %cst_16 = arith.constant 0.000000e+00 : f32
    %31 = vector.broadcast %cst_16 : f32 to vector<6x16x16xf32>
    %32 = arith.select %30, %21, %31 : vector<6x16x16xi1>, vector<6x16x16xf32>
    %cst_17 = arith.constant 2.000000e+00 : f32
    %33 = vector.broadcast %cst_17 : f32 to vector<6x16x16xf32>
    %34 = arith.mulf %33, %6 : vector<6x16x16xf32>
    %35 = arith.addf %20, %34 : vector<6x16x16xf32>
    %36 = arith.addf %35, %32 : vector<6x16x16xf32>
    %37 = arith.subf %20, %32 : vector<6x16x16xf32>
    %c15_i32_18 = arith.constant 15 : i32
    %38 = tpu.dynamic_rotate %36 by %c15_i32_18 dim 2 : vector<6x16x16xf32>, i32 -> vector<6x16x16xf32>
    %c1_i32_19 = arith.constant 1 : i32
    %39 = vector.broadcast %c1_i32_19 : i32 to vector<6x16x16xi32>
    %40 = arith.addi %8, %39 : vector<6x16x16xi32>
    %c0_i32_20 = arith.constant 0 : i32
    %41 = vector.broadcast %c0_i32_20 : i32 to vector<6x16x16xi32>
    %42 = arith.cmpi sge, %40, %41 : vector<6x16x16xi32>
    %c1_i32_21 = arith.constant 1 : i32
    %43 = vector.broadcast %c1_i32_21 : i32 to vector<6x16x16xi32>
    %44 = arith.addi %8, %43 : vector<6x16x16xi32>
    %c16_i32_22 = arith.constant 16 : i32
    %45 = vector.broadcast %c16_i32_22 : i32 to vector<6x16x16xi32>
    %46 = arith.cmpi slt, %44, %45 : vector<6x16x16xi32>
    %47 = arith.andi %42, %46 : vector<6x16x16xi1>
    %cst_23 = arith.constant 0.000000e+00 : f32
    %48 = vector.broadcast %cst_23 : f32 to vector<6x16x16xf32>
    %49 = arith.select %47, %38, %48 : vector<6x16x16xi1>, vector<6x16x16xf32>
    %c1_i32_24 = arith.constant 1 : i32
    %50 = tpu.dynamic_rotate %36 by %c1_i32_24 dim 2 : vector<6x16x16xf32>, i32 -> vector<6x16x16xf32>
    %c-1_i32_25 = arith.constant -1 : i32
    %51 = vector.broadcast %c-1_i32_25 : i32 to vector<6x16x16xi32>
    %52 = arith.addi %8, %51 : vector<6x16x16xi32>
    %c0_i32_26 = arith.constant 0 : i32
    %53 = vector.broadcast %c0_i32_26 : i32 to vector<6x16x16xi32>
    %54 = arith.cmpi sge, %52, %53 : vector<6x16x16xi32>
    %c-1_i32_27 = arith.constant -1 : i32
    %55 = vector.broadcast %c-1_i32_27 : i32 to vector<6x16x16xi32>
    %56 = arith.addi %8, %55 : vector<6x16x16xi32>
    %c16_i32_28 = arith.constant 16 : i32
    %57 = vector.broadcast %c16_i32_28 : i32 to vector<6x16x16xi32>
    %58 = arith.cmpi slt, %56, %57 : vector<6x16x16xi32>
    %59 = arith.andi %54, %58 : vector<6x16x16xi1>
    %cst_29 = arith.constant 0.000000e+00 : f32
    %60 = vector.broadcast %cst_29 : f32 to vector<6x16x16xf32>
    %61 = arith.select %59, %50, %60 : vector<6x16x16xi1>, vector<6x16x16xf32>
    %62 = arith.subf %49, %61 : vector<6x16x16xf32>
    %c1_i32_30 = arith.constant 1 : i32
    %63 = tpu.dynamic_rotate %37 by %c1_i32_30 dim 2 : vector<6x16x16xf32>, i32 -> vector<6x16x16xf32>
    %c-1_i32_31 = arith.constant -1 : i32
    %64 = vector.broadcast %c-1_i32_31 : i32 to vector<6x16x16xi32>
    %65 = arith.addi %8, %64 : vector<6x16x16xi32>
    %c0_i32_32 = arith.constant 0 : i32
    %66 = vector.broadcast %c0_i32_32 : i32 to vector<6x16x16xi32>
    %67 = arith.cmpi sge, %65, %66 : vector<6x16x16xi32>
    %c-1_i32_33 = arith.constant -1 : i32
    %68 = vector.broadcast %c-1_i32_33 : i32 to vector<6x16x16xi32>
    %69 = arith.addi %8, %68 : vector<6x16x16xi32>
    %c16_i32_34 = arith.constant 16 : i32
    %70 = vector.broadcast %c16_i32_34 : i32 to vector<6x16x16xi32>
    %71 = arith.cmpi slt, %69, %70 : vector<6x16x16xi32>
    %72 = arith.andi %67, %71 : vector<6x16x16xi1>
    %cst_35 = arith.constant 0.000000e+00 : f32
    %73 = vector.broadcast %cst_35 : f32 to vector<6x16x16xf32>
    %74 = arith.select %72, %63, %73 : vector<6x16x16xi1>, vector<6x16x16xf32>
    %cst_36 = arith.constant 2.000000e+00 : f32
    %75 = vector.broadcast %cst_36 : f32 to vector<6x16x16xf32>
    %76 = arith.mulf %75, %37 : vector<6x16x16xf32>
    %77 = arith.addf %74, %76 : vector<6x16x16xf32>
    %c15_i32_37 = arith.constant 15 : i32
    %78 = tpu.dynamic_rotate %37 by %c15_i32_37 dim 2 : vector<6x16x16xf32>, i32 -> vector<6x16x16xf32>
    %c1_i32_38 = arith.constant 1 : i32
    %79 = vector.broadcast %c1_i32_38 : i32 to vector<6x16x16xi32>
    %80 = arith.addi %8, %79 : vector<6x16x16xi32>
    %c0_i32_39 = arith.constant 0 : i32
    %81 = vector.broadcast %c0_i32_39 : i32 to vector<6x16x16xi32>
    %82 = arith.cmpi sge, %80, %81 : vector<6x16x16xi32>
    %c1_i32_40 = arith.constant 1 : i32
    %83 = vector.broadcast %c1_i32_40 : i32 to vector<6x16x16xi32>
    %84 = arith.addi %8, %83 : vector<6x16x16xi32>
    %c16_i32_41 = arith.constant 16 : i32
    %85 = vector.broadcast %c16_i32_41 : i32 to vector<6x16x16xi32>
    %86 = arith.cmpi slt, %84, %85 : vector<6x16x16xi32>
    %87 = arith.andi %82, %86 : vector<6x16x16xi1>
    %cst_42 = arith.constant 0.000000e+00 : f32
    %88 = vector.broadcast %cst_42 : f32 to vector<6x16x16xf32>
    %89 = arith.select %87, %78, %88 : vector<6x16x16xi1>, vector<6x16x16xf32>
    %90 = arith.addf %77, %89 : vector<6x16x16xf32>
    %91 = math.absf %62 : vector<6x16x16xf32>
    %92 = math.absf %90 : vector<6x16x16xf32>
    %93 = arith.addf %91, %92 : vector<6x16x16xf32>
    %94 = vector.extract_strided_slice %93 {offsets = [0, 0, 0], sizes = [2, 16, 16], strides = [1, 1, 1]} : vector<6x16x16xf32> to vector<2x16x16xf32>
    %95 = vector.extract_strided_slice %93 {offsets = [2, 0, 0], sizes = [2, 16, 16], strides = [1, 1, 1]} : vector<6x16x16xf32> to vector<2x16x16xf32>
    %96 = vector.extract_strided_slice %93 {offsets = [4, 0, 0], sizes = [2, 16, 16], strides = [1, 1, 1]} : vector<6x16x16xf32> to vector<2x16x16xf32>
    %97 = arith.maximumf %94, %95 : vector<2x16x16xf32>
    %98 = arith.subf %96, %97 : vector<2x16x16xf32>
    %99 = math.absf %98 : vector<2x16x16xf32>
    %100 = vector.shape_cast %99 : vector<2x16x16xf32> to vector<1x2x16x16xf32>
    %cst_43 = arith.constant dense<0.000000e+00> : vector<1xf32>
    %101 = vector.multi_reduction <add>, %100, %cst_43 [1, 2, 3] : vector<1x2x16x16xf32> to vector<1xf32>
    %102 = vector.shape_cast %101 : vector<1xf32> to vector<1x1x1x1xf32>
    %103 = vector.extract %102[0, 0, 0, 0] : f32 from vector<1x1x1x1xf32>
    %c0_44 = arith.constant 0 : index
    %c0_45 = arith.constant 0 : index
    %104 = memref.load %arg4[%c0_44, %c0_45] : memref<1x1xf32, #tpu.memory_space<smem>>
    memref.store %103, %arg4[%c0_44, %c0_45] : memref<1x1xf32, #tpu.memory_space<smem>>
    return
  }
  func.func @transform_0(%arg0: i32) -> (i32, i32, i32, i32) {
    %c0_i32 = arith.constant 0 : i32
    %c0_i32_0 = arith.constant 0 : i32
    %c0_i32_1 = arith.constant 0 : i32
    %c0_i32_2 = arith.constant 0 : i32
    %c0_i32_3 = arith.constant 0 : i32
    return %c0_i32, %c0_i32_0, %c0_i32_1, %c0_i32_2 : i32, i32, i32, i32
  }
  func.func @transform_1(%arg0: i32) -> (i32, i32, i32, i32) {
    %c0_i32 = arith.constant 0 : i32
    %c0_i32_0 = arith.constant 0 : i32
    %c0_i32_1 = arith.constant 0 : i32
    %c0_i32_2 = arith.constant 0 : i32
    %c0_i32_3 = arith.constant 0 : i32
    return %c0_i32, %c0_i32_0, %c0_i32_1, %c0_i32_2 : i32, i32, i32, i32
  }
  func.func @transform_2(%arg0: i32) -> (i32, i32, i32, i32) {
    %c0_i32 = arith.constant 0 : i32
    %c0_i32_0 = arith.constant 0 : i32
    %c0_i32_1 = arith.constant 0 : i32
    %c0_i32_2 = arith.constant 0 : i32
    %c0_i32_3 = arith.constant 0 : i32
    return %c0_i32, %c0_i32_0, %c0_i32_1, %c0_i32_2 : i32, i32, i32, i32
  }
  func.func @transform_3(%arg0: i32) -> (i32, i32) {
    %c0_i32 = arith.constant 0 : i32
    %c0_i32_0 = arith.constant 0 : i32
    %c0_i32_1 = arith.constant 0 : i32
    return %c0_i32, %c0_i32_0 : i32, i32
  }
}

</mosaic_0001>

<bundles_post_ra>
// kernel: tpu_custom_call.1
= control target key start
LH: loop header
LB: loop body
LE: loop exit
PB: predicated region body
PF: predicated region fallthrough
CT: control target
= control target key end

     0   :  { %8 = vsyncpa [#allocation3], 0  ;;  %s1452_s0 = inlined_call_operand.hbm [shape: f32[2,4,16,16], index: 0, kind: input, shape index: {}]   ;;  %s1453_s1 = inlined_call_operand.hbm [shape: f32[2,4,16,16], index: 1, kind: input, shape index: {}]   ;;  %s1454_s2 = inlined_call_operand.hbm [shape: f32[2,4,16,16], index: 2, kind: input, shape index: {}]   ;;  %s1455_s3 = inlined_call_operand.hbm [shape: f32[1,1], index: 3, kind: output, shape index: {}]  }
   0x1   :  { %9 = vsyncpa [#allocation6], 0 }
   0x2   :  { %10 = vsyncpa [#allocation4], 0 }
   0x3   :  { %s20_s12 = sld [smem:[#allocation0]]   ;;  %s837_s13 = smov [#allocation2]  }
   0x4   :  { %s28_s14 = sshll.u32 %s837_s13, 4  ;;  %s838_s15 = smov 1024   ;;  %s29_s14 = int_to_ptr.vmem [resolvable:$true] %s28_s14 }
   0x5   :  { %35 = sst [smem:[#allocation10]] %s838_s15  ;;  %s839_s16 = smov 256  }
   0x6   :  { %37 = sst [smem:[#allocation10 + $0x1]] %s839_s16  ;;  %s840_s17 = smov 2  }
   0x7   :  { %39 = sst [smem:[#allocation10 + $0x2]] %s840_s17  ;;  %s841_s19 = smov 128  }
   0x8   :  { %41 = sst [smem:[#allocation10 + $0x3]] %s841_s19  ;;  %s842_s21 = smov 8  }
   0x9   :  { %s785_s18 = sshll.u32 %s20_s12, 26  ;;  %43 = sst [smem:[#allocation10 + $0x4]] %s841_s19 }
   0xa   :  { %s786_s20 = sadd.s32 134217728, %s785_s18  ;;  %45 = sst [smem:[#allocation10 + $0x5]] %s842_s21 }
   0xb   :  { %s843_s22 = smov [#allocation3]   ;;  %s844_s23 = smov [#allocation9]  }
   0xc   :  { %47 = dma.general %s1452_s0, 512, %s29_s14, %s843_s22, %s844_s23, [#allocation10], %s786_s20, 0  }
   0xd   :  { %s57_s26 = sld [smem:[#allocation0]]   ;;  %s845_s27 = smov [#allocation5]  }
   0xe   :  { %s65_s28 = sshll.u32 %s845_s27, 4  ;;  %s846_s29 = smov 1024   ;;  %s66_s28 = int_to_ptr.vmem [resolvable:$true] %s65_s28 }
   0xf   :  { %72 = sst [smem:[#allocation12]] %s846_s29  ;;  %s847_s30 = smov 256  }
  0x10   :  { %74 = sst [smem:[#allocation12 + $0x1]] %s847_s30  ;;  %s848_s4 = smov 2  }
  0x11   :  { %76 = sst [smem:[#allocation12 + $0x2]] %s848_s4  ;;  %s849_s6 = smov 128  }
  0x12   :  { %78 = sst [smem:[#allocation12 + $0x3]] %s849_s6  ;;  %s850_s8 = smov 8  }
  0x13   :  { %s787_s5 = sshll.u32 %s57_s26, 26  ;;  %80 = sst [smem:[#allocation12 + $0x4]] %s849_s6 }
  0x14   :  { %s788_s7 = sadd.s32 134217728, %s787_s5  ;;  %82 = sst [smem:[#allocation12 + $0x5]] %s850_s8 }
  0x15   :  { %s851_s9 = smov [#allocation6]   ;;  %s852_s10 = smov [#allocation11]  }
  0x16   :  { %84 = dma.general %s1453_s1, 512, %s66_s28, %s851_s9, %s852_s10, [#allocation12], %s788_s7, 0  }
  0x17   :  { %s94_s12 = sld [smem:[#allocation0]]   ;;  %s853_s13 = smov [#allocation7]  }
  0x18   :  { %s102_s14 = sshll.u32 %s853_s13, 4  ;;  %s854_s15 = smov 1024   ;;  %s103_s14 = int_to_ptr.vmem [resolvable:$true] %s102_s14 }
  0x19   :  { %109 = sst [smem:[#allocation14]] %s854_s15  ;;  %s855_s16 = smov 256  }
  0x1a   :  { %111 = sst [smem:[#allocation14 + $0x1]] %s855_s16  ;;  %s856_s17 = smov 2  }
  0x1b   :  { %113 = sst [smem:[#allocation14 + $0x2]] %s856_s17  ;;  %s857_s19 = smov 128  }
  0x1c   :  { %115 = sst [smem:[#allocation14 + $0x3]] %s857_s19  ;;  %s858_s21 = smov 8  }
  0x1d   :  { %s789_s18 = sshll.u32 %s94_s12, 26  ;;  %117 = sst [smem:[#allocation14 + $0x4]] %s857_s19 }
  0x1e   :  { %s790_s20 = sadd.s32 134217728, %s789_s18  ;;  %119 = sst [smem:[#allocation14 + $0x5]] %s858_s21 }
  0x1f   :  { %s859_s22 = smov [#allocation6]   ;;  %s860_s23 = smov [#allocation13]  }
  0x20   :  { %121 = dma.general %s1454_s2, 512, %s103_s14, %s859_s22, %s860_s23, [#allocation14], %s790_s20, 0  }
  0x21   :  { %831 = dma.done.wait [#allocation3], 512  }
  0x22   :  { %832 = vsyncadd [#allocation3], 4294966784 }
  0x23   :  { %833 = dma.done.wait [#allocation6], 1024  }
  0x24   :  { %834 = vsyncadd [#allocation6], 4294966272  ;;  %v143_v0 = vlaneseq  ;;  %v135_v4 = vld [vmem:[#allocation5] sm:$0xff]  ;;  %v136_v5 = vld [vmem:[#allocation5 + $0x8] sm:$0xff]  ;;  %s861_s2 = smov 16   ;;  %vm286_vm4 = vcmask 1047680  }
  0x25   :  { %v131_v6 = vld [vmem:[#allocation2] sm:$0xff]  ;;  %v150_v8 = vrot.slane %v135_v4, 7  ;;  %v156_v9 = vrot.slane %v136_v5, 7  ;;  %v195_v10 = vrot.slane %v135_v4, 1  ;;  %v201_v11 = vrot.slane %v136_v5, 1  ;;  %v132_v12 = vld [vmem:[#allocation2 + $0x8] sm:$0xff] }
  0x26   :  { %v895_v1 = vshrl.u32 %v143_v0, 7  ;;  %v148_v13 = vrot.slane %v131_v6, 7  ;;  %v154_v14 = vrot.slane %v132_v12, 7  ;;  %v193_v15 = vrot.slane %v131_v6, 1  ;;  %v916_v21 = vld [vmem:[#allocation2 + $0x10] sm:$0xff]  ;;  %v925_v25 = vld [vmem:[#allocation2 + $0x18] sm:$0xff] }
  0x27   :  { %v199_v16 = vrot.slane %v132_v12, 1  ;;  %v149_v33 = vrot.slane %v916_v21, 7  ;;  %v943_v34 = vld [vmem:[#allocation5 + $0x10] sm:$0xff]  ;;  %v155_v36 = vrot.slane %v925_v25, 7  ;;  %v194_v37 = vrot.slane %v916_v21, 1  ;;  %v956_v43 = vld [vmem:[#allocation5 + $0x18] sm:$0xff] }
  0x28   :  { %v898_v2 = vadd.s32 4294967295, %v895_v1  ;;  %v145_v3 = vadd.s32 8, %v895_v1  ;;  %vm160_vm0 = vcmp.lt.s32.totalorder %v895_v1, 1  ;;  %vm205_vm2 = vcmp.lt.s32.totalorder %v895_v1, 7  ;;  %v139_v53 = vld [vmem:[#allocation7] sm:$0xff]  ;;  %v140_v54 = vld [vmem:[#allocation7 + $0x8] sm:$0xff] }
  0x29   :  { %v169_v17 = vsel %vm160_vm0, %v156_v9, %v150_v8  ;;  %v910_v18 = vsel %vm205_vm2, %v195_v10, %v201_v11  ;;  %v163_v19 = vsel %vm160_vm0, %v150_v8, %v156_v9  ;;  %v214_v20 = vsel %vm205_vm2, %v201_v11, %v195_v10  ;;  %s862_s25 = smov 113   ;;  %s863_s26 = smov 127  }
  0x2a   :  { %vm175_vm1 = vcmp.ge.s32.totalorder %v898_v2, 0  ;;  %v904_v7 = vadd.s32 1, %v145_v3  ;;  %v167_v23 = vsel %vm160_vm0, %v154_v14, %v148_v13  ;;  %v206_v24 = vsel %vm205_vm2, %v193_v15, %v199_v16  ;;  %s821_s30 = scalar_lea.hbm %s1455_s3, 16 }
  0x2b   :  { %v185_v22 = vsel %vm175_vm1, %v169_v17, 0.0  ;;  %v181_v27 = vsel %vm175_vm1, %v167_v23, 0.0  ;;  %v161_v29 = vsel %vm160_vm0, %v148_v13, %v154_v14  ;;  %v212_v32 = vsel %vm205_vm2, %v199_v16, %v193_v15  ;;  %p822_p0 = scmp.ne.s32.totalorder %s1455_s3, %s821_s30  ;;  %p825_p1 = scmp.lt.u32.totalorder %s821_s30, %s1455_s3 }
  0x2c   :  { %vm223_vm3 = vcmp.lt.s32.totalorder %v904_v7, 16  ;;  %v928_v26 = vsub.f32 %v185_v22, %v910_v18  ;;  %v936_v30 = vsub.f32 %v181_v27, %v206_v24  ;;  %v200_v38 = vrot.slane %v925_v25, 1 }
  0x2d   :  { %v231_v28 = vsel %vm223_vm3, %v214_v20, 0.0  ;;  %v227_v35 = vsel %vm223_vm3, %v212_v32, 0.0  ;;  %v239_v40 = vmul.f32 2.0, %v132_v12  ;;  %v238_v41 = vmul.f32 2.0, %v131_v6  ;;  %v141_v32 = vld [vmem:[#allocation7 + $0x10] sm:$0xff]  ;;  %p827_p2 = pnand %p825_p1, %p822_p0 }
  0x2e   :  { %v938_v31 = vsub.f32 %v163_v19, %v231_v28  ;;  %499 = vrot.lane.b32.xlu1 %v928_v26, %s861_s2  ;;  %487 = vrot.lane.b32.xlu0 %v936_v30, %s861_s2  ;;  %v954_v39 = vsub.f32 %v161_v29, %v227_v35  ;;  %v243_v42 = vmul.f32 2.0, %v136_v5  ;;  %v168_v44 = vsel %vm160_vm0, %v155_v36, %v149_v33 }
  0x2f   :  { %v207_v45 = vsel %vm205_vm2, %v194_v37, %v200_v38  ;;  %v151_v46 = vrot.slane %v943_v34, 7  ;;  %v183_v47 = vsel %vm175_vm1, %v168_v44, 0.0  ;;  %v251_v48 = vadd.f32 %v239_v40, %v161_v29 }
  0x30   :  { %v250_v49 = vadd.f32 %v238_v41, %v181_v27  ;;  %v255_v50 = vadd.f32 %v243_v42, %v163_v19  ;;  %v242_v51 = vmul.f32 2.0, %v135_v4  ;;  %v157_v52 = vrot.slane %v956_v43, 7 }
  0x31   :  { %v978_v55 = vsub.f32 %v183_v47, %v207_v45  ;;  %v980_v56 = vadd.f32 %v251_v48, %v227_v35  ;;  %v196_v57 = vrot.slane %v943_v34, 1  ;;  %v202_v58 = vrot.slane %v956_v43, 1  ;;  %v142_v35 = vld [vmem:[#allocation7 + $0x18] sm:$0xff] }
  0x32   :  { %502 = vrot.lane.b32.xlu1 %v938_v31, %s861_s2  ;;  %490 = vrot.lane.b32.xlu0 %v954_v39, %s861_s2  ;;  %v170_v59 = vsel %vm160_vm0, %v157_v52, %v151_v46  ;;  %v152_v60 = vrot.slane %v139_v53, 7  ;;  %v158_v61 = vrot.slane %v140_v54, 7  ;;  %v197_v62 = vrot.slane %v139_v53, 1 }
  0x33   :  { %v203_v63 = vrot.slane %v140_v54, 1  ;;  %v990_v3 = vadd.f32 %v255_v50, %v231_v28  ;;  %v994_v4 = vadd.f32 %v250_v49, %v206_v24  ;;  %v254_v5 = vadd.f32 %v242_v51, %v185_v22 }
  0x34   :  { %v187_v6 = vsel %vm175_vm1, %v170_v59, 0.0  ;;  %v209_v8 = vsel %vm205_vm2, %v196_v57, %v202_v58  ;;  %v171_v10 = vsel %vm160_vm0, %v158_v61, %v152_v60  ;;  %v244_v12 = vmul.f32 2.0, %v943_v34 }
  0x35   :  { %v216_v9 = vsel %vm205_vm2, %v203_v63, %v197_v62  ;;  %v1006_v11 = vsub.f32 %v187_v6, %v209_v8  ;;  %v1012_v13 = vadd.f32 %v254_v5, %v910_v18  ;;  %v165_v14 = vsel %vm160_vm0, %v152_v60, %v158_v61 }
  0x36   :  { %290 = vrot.lane.b32.xlu1 %v980_v56, %s861_s2  ;;  %493 = vrot.lane.b32.xlu0 %v978_v55, %s861_s2  ;;  %v235_v15 = vsel %vm223_vm3, %v216_v9, 0.0  ;;  %v240_v16 = vmul.f32 2.0, %v916_v21  ;;  %v189_v17 = vsel %vm175_vm1, %v171_v10, 0.0  ;;  %v210_v19 = vsel %vm205_vm2, %v197_v62, %v203_v63 }
  0x37   :  { %v1025_v20 = vsub.f32 %v165_v14, %v235_v15  ;;  %v256_v18 = vadd.f32 %v244_v12, %v187_v6  ;;  %v247_v22 = vmul.f32 2.0, %v140_v54  ;;  %v1029_v23 = vsub.f32 %v189_v17, %v210_v19 }
  0x38   :  { %v252_v24 = vadd.f32 %v240_v16, %v183_v47  ;;  %v246_v27 = vmul.f32 2.0, %v139_v53  ;;  %v215_v42 = vsel %vm205_vm2, %v202_v58, %v196_v57  ;;  %v213_v44 = vsel %vm205_vm2, %v200_v38, %v194_v37 }
  0x39   :  { %v1033_v28 = vadd.f32 %v256_v18, %v209_v8  ;;  %v259_v29 = vadd.f32 %v247_v22, %v165_v14  ;;  %v153_v47 = vrot.slane %v141_v32, 7  ;;  %v159_v48 = vrot.slane %v142_v35, 7 }
  0x3a   :  { %302 = vrot.lane.b32.xlu1 %v990_v3, %s861_s2  ;;  %287 = vrot.lane.b32.xlu0 %v994_v4, %s861_s2  ;;  %v1037_v40 = vadd.f32 %v252_v24, %v207_v45  ;;  %v258_v41 = vadd.f32 %v246_v27, %v189_v17  ;;  %v241_v45 = vmul.f32 2.0, %v925_v25  ;;  %v164_v51 = vsel %vm160_vm0, %v151_v46, %v157_v52 }
  0x3b   :  { %v1049_v49 = vadd.f32 %v259_v29, %v235_v15  ;;  %v233_v37 = vsel %vm223_vm3, %v215_v42, 0.0  ;;  %v162_v38 = vsel %vm160_vm0, %v149_v33, %v155_v36  ;;  %v229_v53 = vsel %vm223_vm3, %v213_v44, 0.0 }
  0x3c   :  { %v1054_v50 = vadd.f32 %v258_v41, %v210_v19  ;;  %v198_v54 = vrot.slane %v141_v32, 1  ;;  %v204_v57 = vrot.slane %v142_v35, 1  ;;  %v172_v34 = vsel %vm160_vm0, %v159_v48, %v153_v47 }
  0x3d   :  { %v1074_v46 = vsub.f32 %v164_v51, %v233_v37  ;;  %v253_v52 = vadd.f32 %v241_v45, %v162_v38  ;;  %v248_v25 = vmul.f32 2.0, %v141_v32  ;;  %v1078_v21 = vsub.f32 %v162_v38, %v229_v53 }
  0x3e   :  { %505 = vrot.lane.b32.xlu1 %v1006_v11, %s861_s2  ;;  %299 = vrot.lane.b32.xlu0 %v1012_v13, %s861_s2  ;;  %v245_v33 = vmul.f32 2.0, %v956_v43  ;;  %v191_v36 = vsel %vm175_vm1, %v172_v34, 0.0  ;;  %v211_v58 = vsel %vm205_vm2, %v198_v54, %v204_v57  ;;  %v249_v61 = vmul.f32 2.0, %v142_v35 }
  0x3f   :  { %v1087_v59 = vadd.f32 %v253_v52, %v229_v53  ;;  %v260_v60 = vadd.f32 %v248_v25, %v191_v36  ;;  %v1091_v62 = vsub.f32 %v191_v36, %v211_v58  ;;  %v166_v2 = vsel %vm160_vm0, %v153_v47, %v159_v48 }
  0x40   :  { %v257_v63 = vadd.f32 %v245_v33, %v164_v51  ;;  %v217_v43 = vsel %vm205_vm2, %v204_v57, %v198_v54  ;;  %v261_v6 = vadd.f32 %v249_v61, %v166_v2  ;;  %vm751_vm9 = vcmask 130048  }
  0x41   :  { %v1099_v5 = vadd.f32 %v260_v60, %v211_v58  ;;  %v237_v9 = vsel %vm223_vm3, %v217_v43, 0.0 }
  0x42   :  { %514 = vrot.lane.b32.xlu1 %v1025_v20, %s861_s2  ;;  %511 = vrot.lane.b32.xlu0 %v1029_v23, %s861_s2  ;;  %v1103_v8 = vadd.f32 %v257_v63, %v233_v37  ;;  %v1109_v10 = vadd.f32 %v261_v6, %v237_v9  ;;  %v1113_v1 = vsub.f32 %v166_v2, %v237_v9 }
  0x46   :  { %305 = vrot.lane.b32.xlu1 %v1033_v28, %s861_s2  ;;  %293 = vrot.lane.b32.xlu0 %v1037_v40, %s861_s2 }
  0x4a   :  { %314 = vrot.lane.b32.xlu1 %v1049_v49, %s861_s2  ;;  %311 = vrot.lane.b32.xlu0 %v1054_v50, %s861_s2 }
  0x4e   :  { %508 = vrot.lane.b32.xlu1 %v1074_v46, %s861_s2  ;;  %496 = vrot.lane.b32.xlu0 %v1078_v21, %s861_s2 }
  0x52   :  { %296 = vrot.lane.b32.xlu1 %v1087_v59, %s861_s2  ;;  %517 = vrot.lane.b32.xlu0 %v1091_v62, %s861_s2 }
  0x56   :  { %317 = vrot.lane.b32.xlu1 %v1099_v5, %s861_s2  ;;  %308 = vrot.lane.b32.xlu0 %v1103_v8, %s861_s2 }
  0x5a   :  { %320 = vrot.lane.b32.xlu1 %v1109_v10, %s861_s2  ;;  %520 = vrot.lane.b32.xlu0 %v1113_v1, %s861_s2 }
  0xa0   :  { %v500_v12 = vpop.permute.xlu1 %499  ;;  %v488_v7 = vpop.permute.xlu0 %487 }
  0xa1   :  { %v489_v14 = vsel %vm286_vm4, %v488_v7, %v936_v30  ;;  %v501_v17 = vsel %vm286_vm4, %v500_v12, %v928_v26 }
  0xa2   :  { %523 = vrot.lane.b32.xlu0 %v489_v14, %s861_s2 }
  0xa4   :  { %v503_v15 = vpop.permute.xlu1 %502  ;;  %v491_v16 = vpop.permute.xlu0 %490 }
  0xa5   :  { %v492_v19 = vsel %vm286_vm4, %v491_v16, %v954_v39  ;;  %v504_v27 = vsel %vm286_vm4, %v503_v15, %v938_v31 }
  0xa6   :  { %531 = vrot.lane.b32.xlu0 %v501_v17, %s861_s2  ;;  %525 = vrot.lane.b32.xlu1 %v492_v19, %s861_s2 }
  0xa8   :  { %v291_v18 = vpop.permute.xlu1 %290  ;;  %v494_v22 = vpop.permute.xlu0 %493 }
  0xa9   :  { %v495_v24 = vsel %vm286_vm4, %v494_v22, %v978_v55  ;;  %v292_v36 = vsel %vm286_vm4, %v291_v18, %v980_v56 }
  0xaa   :  { %527 = vrot.lane.b32.xlu0 %v495_v24, %s861_s2  ;;  %533 = vrot.lane.b32.xlu1 %v504_v27, %s861_s2 }
  0xac   :  { %v303_v29 = vpop.permute.xlu1 %302  ;;  %v288_v32 = vpop.permute.xlu0 %287 }
  0xad   :  { %v304_v61 = vsel %vm286_vm4, %v303_v29, %v990_v3  ;;  %v289_v15 = vsel %vm286_vm4, %v288_v32, %v994_v4 }
  0xb0   :  { %v506_v35 = vpop.permute.xlu1 %505  ;;  %v300_v41 = vpop.permute.xlu0 %299 }
  0xb1   :  { %v507_v42 = vsel %vm286_vm4, %v506_v35, %v1006_v11  ;;  %v301_v17 = vsel %vm286_vm4, %v300_v41, %v1012_v13 }
  0xb2   :  { %535 = vrot.lane.b32.xlu1 %v507_v42, %s861_s2 }
  0xb4   :  { %v515_v44 = vpop.permute.xlu1 %514  ;;  %v512_v47 = vpop.permute.xlu0 %511 }
  0xb5   :  { %v516_v48 = vsel %vm286_vm4, %v515_v44, %v1025_v20  ;;  %v513_v45 = vsel %vm286_vm4, %v512_v47, %v1029_v23 }
  0xb6   :  { %541 = vrot.lane.b32.xlu1 %v516_v48, %s861_s2  ;;  %539 = vrot.lane.b32.xlu0 %v513_v45, %s861_s2 }
  0xb8   :  { %v306_v51 = vpop.permute.xlu1 %305  ;;  %v294_v37 = vpop.permute.xlu0 %293 }
  0xb9   :  { %v307_v16 = vsel %vm286_vm4, %v306_v51, %v1033_v28  ;;  %v295_v18 = vsel %vm286_vm4, %v294_v37, %v1037_v40 }
  0xbc   :  { %v315_v38 = vpop.permute.xlu1 %314  ;;  %v312_v53 = vpop.permute.xlu0 %311 }
  0xbd   :  { %v316_v43 = vsel %vm286_vm4, %v315_v38, %v1049_v49  ;;  %v313_v22 = vsel %vm286_vm4, %v312_v53, %v1054_v50 }
  0xc0   :  { %v509_v54 = vpop.permute.xlu1 %508  ;;  %v497_v57 = vpop.permute.xlu0 %496 }
  0xc1   :  { %v510_v34 = vsel %vm286_vm4, %v509_v54, %v1074_v46  ;;  %v498_v52 = vsel %vm286_vm4, %v497_v57, %v1078_v21 }
  0xc2   :  { %537 = vrot.lane.b32.xlu1 %v510_v34, %s861_s2  ;;  %529 = vrot.lane.b32.xlu0 %v498_v52, %s861_s2 }
  0xc4   :  { %v297_v25 = vpop.permute.xlu1 %296  ;;  %v518_v33 = vpop.permute.xlu0 %517 }
  0xc5   :  { %v519_v58 = vsel %vm286_vm4, %v518_v33, %v1091_v62  ;;  %v298_v9 = vsel %vm286_vm4, %v297_v25, %v1087_v59 }
  0xc6   :  { %325 = vrot.lane.b32.xlu1 %v292_v36, %s861_s2  ;;  %543 = vrot.lane.b32.xlu0 %v519_v58, %s861_s2 }
  0xc8   :  { %v309_v60 = vpop.permute.xlu0 %308  ;;  %v318_v63 = vpop.permute.xlu1 %317 }
  0xc9   :  { %v310_v7 = vsel %vm286_vm4, %v309_v60, %v1103_v8  ;;  %v319_v19 = vsel %vm286_vm4, %v318_v63, %v1099_v5 }
  0xca   :  { %333 = vrot.lane.b32.xlu1 %v304_v61, %s861_s2 }
  0xcc   :  { %v521_v2 = vpop.permute.xlu0 %520  ;;  %v321_v12 = vpop.permute.xlu1 %320 }
  0xcd   :  { %v522_v6 = vsel %vm286_vm4, %v521_v2, %v1113_v1  ;;  %v322_v14 = vsel %vm286_vm4, %v321_v12, %v1109_v10 }
  0xce   :  { %341 = vrot.lane.b32.xlu1 %v316_v43, %s861_s2  ;;  %545 = vrot.lane.b32.xlu0 %v522_v6, %s861_s2 }
  0xd2   :  { %329 = vrot.lane.b32.xlu1 %v298_v9, %s861_s2  ;;  %337 = vrot.lane.b32.xlu0 %v310_v7, %s861_s2 }
  0xd6   :  { %345 = vrot.lane.b32.xlu1 %v322_v14, %s861_s2  ;;  %323 = vrot.lane.b32.xlu0 %v289_v15, %s861_s2 }
  0xda   :  { %335 = vrot.lane.b32.xlu1 %v307_v16, %s861_s2  ;;  %331 = vrot.lane.b32.xlu0 %v301_v17, %s861_s2 }
  0xde   :  { %343 = vrot.lane.b32.xlu1 %v319_v19, %s861_s2  ;;  %327 = vrot.lane.b32.xlu0 %v295_v18, %s861_s2 }
  0xe2   :  { %339 = vrot.lane.b32.xlu0 %v313_v22, %s861_s2 }
 0x114   :  { %v524_v24 = vpop.permute.xlu0 %523 }
 0x115   :  { %v547_v27 = vsel %vm286_vm4, %v524_v24, %v936_v30 }
 0x116   :  { %571 = vrot.lane.b32.xlu0 %v547_v27, %s862_s25 }
 0x118   :  { %v532_v29 = vpop.permute.xlu0 %531  ;;  %v526_v32 = vpop.permute.xlu1 %525 }
 0x119   :  { %v551_v35 = vsel %vm286_vm4, %v532_v29, %v928_v26  ;;  %v548_v41 = vsel %vm286_vm4, %v526_v32, %v954_v39 }
 0x11a   :  { %579 = vrot.lane.b32.xlu0 %v551_v35, %s862_s25  ;;  %573 = vrot.lane.b32.xlu1 %v548_v41, %s862_s25 }
 0x11c   :  { %v528_v42 = vpop.permute.xlu0 %527  ;;  %v534_v44 = vpop.permute.xlu1 %533 }
 0x11d   :  { %v549_v47 = vsel %vm286_vm4, %v528_v42, %v978_v55  ;;  %v552_v48 = vsel %vm286_vm4, %v534_v44, %v938_v31 }
 0x11e   :  { %575 = vrot.lane.b32.xlu0 %v549_v47, %s862_s25  ;;  %581 = vrot.lane.b32.xlu1 %v552_v48, %s862_s25 }
 0x124   :  { %v536_v45 = vpop.permute.xlu1 %535 }
 0x125   :  { %v553_v51 = vsel %vm286_vm4, %v536_v45, %v1006_v11 }
 0x126   :  { %583 = vrot.lane.b32.xlu1 %v553_v51, %s862_s25 }
 0x128   :  { %v542_v37 = vpop.permute.xlu1 %541  ;;  %v540_v38 = vpop.permute.xlu0 %539 }
 0x129   :  { %v556_v53 = vsel %vm286_vm4, %v542_v37, %v1025_v20  ;;  %v555_v54 = vsel %vm286_vm4, %v540_v38, %v1029_v23  ;;  %v620_v37 = vmul.f32 2.0, %v954_v39 }
 0x12a   :  { %589 = vrot.lane.b32.xlu1 %v556_v53, %s862_s25  ;;  %587 = vrot.lane.b32.xlu0 %v555_v54, %s862_s25 }
 0x12e   :  { %645 = vrot.lane.b32.xlu1 %v548_v41, %s863_s26  ;;  %643 = vrot.lane.b32.xlu0 %v547_v27, %s863_s26 }
 0x132   :  { %653 = vrot.lane.b32.xlu1 %v552_v48, %s863_s26  ;;  %651 = vrot.lane.b32.xlu0 %v551_v35, %s863_s26 }
 0x134   :  { %v538_v57 = vpop.permute.xlu1 %537  ;;  %v530_v34 = vpop.permute.xlu0 %529 }
 0x135   :  { %v554_v52 = vsel %vm286_vm4, %v538_v57, %v1074_v46  ;;  %v550_v25 = vsel %vm286_vm4, %v530_v34, %v1078_v21 }
 0x136   :  { %585 = vrot.lane.b32.xlu1 %v554_v52, %s862_s25  ;;  %577 = vrot.lane.b32.xlu0 %v550_v25, %s862_s25 }
 0x138   :  { %v544_v33 = vpop.permute.xlu0 %543  ;;  %v326_v58 = vpop.permute.xlu1 %325 }
 0x139   :  { %v557_v36 = vsel %vm286_vm4, %v544_v33, %v1091_v62  ;;  %v348_v43 = vsel %vm286_vm4, %v326_v58, %v980_v56  ;;  %v623_v58 = vmul.f32 2.0, %v928_v26 }
 0x13a   :  { %647 = vrot.lane.b32.xlu1 %v549_v47, %s863_s26  ;;  %591 = vrot.lane.b32.xlu0 %v557_v36, %s862_s25 }
 0x13c   :  { %v334_v63 = vpop.permute.xlu1 %333 }
 0x13d   :  { %v352_v12 = vsel %vm286_vm4, %v334_v63, %v990_v3 }
 0x13e   :  { %659 = vrot.lane.b32.xlu1 %v555_v54, %s863_s26  ;;  %655 = vrot.lane.b32.xlu0 %v553_v51, %s863_s26 }
 0x140   :  { %v546_v60 = vpop.permute.xlu0 %545  ;;  %v342_v2 = vpop.permute.xlu1 %341 }
 0x141   :  { %v558_v61 = vsel %vm286_vm4, %v546_v60, %v1113_v1  ;;  %v356_v3 = vsel %vm286_vm4, %v342_v2, %v1049_v49 }
 0x142   :  { %661 = vrot.lane.b32.xlu0 %v556_v53, %s863_s26  ;;  %593 = vrot.lane.b32.xlu1 %v558_v61, %s862_s25  ;;  %v619_v53 = vmul.f32 2.0, %v936_v30 }
 0x144   :  { %v338_v6 = vpop.permute.xlu0 %337  ;;  %v330_v7 = vpop.permute.xlu1 %329 }
 0x145   :  { %v354_v9 = vsel %vm286_vm4, %v338_v6, %v1103_v8  ;;  %v350_v14 = vsel %vm286_vm4, %v330_v7, %v1087_v59 }
 0x146   :  { %649 = vrot.lane.b32.xlu0 %v550_v25, %s863_s26  ;;  %657 = vrot.lane.b32.xlu1 %v554_v52, %s863_s26  ;;  %v624_v25 = vmul.f32 2.0, %v938_v31 }
 0x148   :  { %v324_v56 = vpop.permute.xlu0 %323  ;;  %v346_v59 = vpop.permute.xlu1 %345 }
 0x149   :  { %v347_v15 = vsel %vm286_vm4, %v324_v56, %v994_v4 }
 0x14a   :  { %663 = vrot.lane.b32.xlu0 %v557_v36, %s863_s26  ;;  %377 = vrot.lane.b32.xlu1 %v348_v43, %s863_s26 }
 0x14c   :  { %v332_v8 = vpop.permute.xlu0 %331  ;;  %v336_v18 = vpop.permute.xlu1 %335 }
 0x14d   :  { %v351_v16 = vsel %vm286_vm4, %v332_v8, %v1012_v13  ;;  %v358_v13 = vsel %vm286_vm4, %v346_v59, %v1109_v10  ;;  %v353_v22 = vsel %vm286_vm4, %v336_v18, %v1033_v28  ;;  %v147_v28 = vand.u32 127, %v143_v0 }
 0x14e   :  { %389 = vrot.lane.b32.xlu0 %v354_v9, %s863_s26  ;;  %385 = vrot.lane.b32.xlu1 %v352_v12, %s863_s26 }
 0x14f   :  { %v423_v10 = vadd.s32 4294967295, %v147_v28  ;;  %v1304_v51 = vadd.s32 1, %v147_v28 }
 0x150   :  { %v328_v4 = vpop.permute.xlu0 %327 }
 0x151   :  { %v349_v49 = vsel %vm286_vm4, %v328_v4, %v1037_v40  ;;  %v344_v40 = vpop.permute.xlu1 %343  ;;  %vm424_vm5 = vcmp.ge.s32.totalorder %v423_v10, 0  ;;  %vm425_vm6 = vcmp.lt.s32.totalorder %v423_v10, 16  ;;  %vm361_vm8 = vcmp.lt.s32.totalorder %v1304_v51, 16 }
 0x152   :  { %429 = vrot.lane.b32.xlu1 %v348_v43, %s862_s25  ;;  %433 = vrot.lane.b32.xlu0 %v350_v14, %s862_s25  ;;  %vm1288_vm7 = vmand %vm424_vm5, %vm425_vm6  ;;  %v627_v4 = vmul.f32 2.0, %v1029_v23 }
 0x154   :  { %v340_v17 = vpop.permute.xlu0 %339 }
 0x155   :  { %v355_v19 = vsel %vm286_vm4, %v340_v17, %v1054_v50  ;;  %v357_v50 = vsel %vm286_vm4, %v344_v40, %v1099_v5  ;;  %v628_v40 = vmul.f32 2.0, %v1025_v20 }
 0x156   :  { %437 = vrot.lane.b32.xlu1 %v352_v12, %s862_s25  ;;  %375 = vrot.lane.b32.xlu0 %v347_v15, %s863_s26 }
 0x15a   :  { %393 = vrot.lane.b32.xlu1 %v356_v3, %s863_s26  ;;  %383 = vrot.lane.b32.xlu0 %v351_v16, %s863_s26 }
 0x15e   :  { %445 = vrot.lane.b32.xlu1 %v356_v3, %s862_s25  ;;  %427 = vrot.lane.b32.xlu0 %v347_v15, %s862_s25 }
 0x162   :  { %435 = vrot.lane.b32.xlu0 %v351_v16, %s862_s25  ;;  %381 = vrot.lane.b32.xlu1 %v350_v14, %s863_s26  ;;  %v621_v14 = vmul.f32 2.0, %v978_v55 }
 0x166   :  { %379 = vrot.lane.b32.xlu0 %v349_v49, %s863_s26  ;;  %441 = vrot.lane.b32.xlu1 %v354_v9, %s862_s25 }
 0x16a   :  { %391 = vrot.lane.b32.xlu0 %v355_v19, %s863_s26  ;;  %397 = vrot.lane.b32.xlu1 %v358_v13, %s863_s26 }
 0x16e   :  { %431 = vrot.lane.b32.xlu0 %v349_v49, %s862_s25  ;;  %387 = vrot.lane.b32.xlu1 %v353_v22, %s863_s26  ;;  %v625_v49 = vmul.f32 2.0, %v1006_v11 }
 0x172   :  { %443 = vrot.lane.b32.xlu0 %v355_v19, %s862_s25  ;;  %439 = vrot.lane.b32.xlu1 %v353_v22, %s862_s25 }
 0x176   :  { %447 = vrot.lane.b32.xlu0 %v357_v50, %s862_s25  ;;  %395 = vrot.lane.b32.xlu1 %v357_v50, %s863_s26 }
 0x17a   :  { %449 = vrot.lane.b32.xlu0 %v358_v13, %s862_s25  ;;  %665 = vrot.lane.b32.xlu1 %v558_v61, %s863_s26 }
 0x188   :  { %v572_v27 = vpop.permute.xlu0 %571 }
 0x189   :  { %v607_v5 = vsel %vm1288_vm7, %v572_v27, 0.0 }
 0x18a   :  { %v631_v36 = vadd.f32 %v619_v53, %v607_v5  ;;  %v622_v5 = vmul.f32 2.0, %v1078_v21 }
 0x18c   :  { %v580_v29 = vpop.permute.xlu0 %579  ;;  %v574_v32 = vpop.permute.xlu1 %573 }
 0x18d   :  { %v611_v35 = vsel %vm1288_vm7, %v580_v29, 0.0  ;;  %v608_v41 = vsel %vm1288_vm7, %v574_v32, 0.0  ;;  %v626_v29 = vmul.f32 2.0, %v1074_v46 }
 0x18e   :  { %v632_v52 = vadd.f32 %v620_v37, %v608_v41  ;;  %v635_v6 = vadd.f32 %v623_v58, %v611_v35 }
 0x190   :  { %v576_v0 = vpop.permute.xlu0 %575  ;;  %v582_v42 = vpop.permute.xlu1 %581 }
 0x191   :  { %v609_v44 = vsel %vm1288_vm7, %v576_v0, 0.0  ;;  %v612_v47 = vsel %vm1288_vm7, %v582_v42, 0.0 }
 0x192   :  { %v636_v2 = vadd.f32 %v624_v25, %v612_v47  ;;  %v633_v16 = vadd.f32 %v621_v14, %v609_v44 }
 0x198   :  { %v584_v48 = vpop.permute.xlu1 %583 }
 0x199   :  { %v613_v45 = vsel %vm1288_vm7, %v584_v48, 0.0 }
 0x19a   :  { %v637_v22 = vadd.f32 %v625_v49, %v613_v45 }
 0x19c   :  { %v590_v38 = vpop.permute.xlu1 %589  ;;  %v588_v54 = vpop.permute.xlu0 %587 }
 0x19d   :  { %v616_v57 = vsel %vm1288_vm7, %v590_v38, 0.0  ;;  %v615_v34 = vsel %vm1288_vm7, %v588_v54, 0.0 }
 0x19e   :  { %v639_v19 = vadd.f32 %v627_v4, %v615_v34  ;;  %v640_v27 = vadd.f32 %v628_v40, %v616_v57 }
 0x1a0   :  { %v646_v33 = vpop.permute.xlu1 %645  ;;  %v644_v39 = vpop.permute.xlu0 %643 }
 0x1a1   :  { %v680_v30 = vsel %vm361_vm8, %v646_v33, 0.0  ;;  %v679_v60 = vsel %vm361_vm8, %v644_v39, 0.0 }
 0x1a2   :  { %v692_v61 = vadd.f32 %v680_v30, %v632_v52  ;;  %v1319_v63 = vadd.f32 %v679_v60, %v631_v36 }
 0x1a4   :  { %v654_v43 = vpop.permute.xlu1 %653  ;;  %v652_v9 = vpop.permute.xlu0 %651  ;;  %v716_v36 = vand.u32 2147483647, %v692_v61 }
 0x1a5   :  { %v684_v31 = vsel %vm361_vm8, %v654_v43, 0.0  ;;  %v683_v26 = vsel %vm361_vm8, %v652_v9, 0.0 }
 0x1a6   :  { %v696_v12 = vadd.f32 %v684_v31, %v636_v2  ;;  %v1325_v7 = vadd.f32 %v683_v26, %v635_v6 }
 0x1a8   :  { %v586_v56 = vpop.permute.xlu1 %585  ;;  %v578_v15 = vpop.permute.xlu0 %577  ;;  %v720_v9 = vand.u32 2147483647, %v696_v12 }
 0x1a9   :  { %v614_v8 = vsel %vm1288_vm7, %v586_v56, 0.0  ;;  %v610_v3 = vsel %vm1288_vm7, %v578_v15, 0.0 }
 0x1aa   :  { %v634_v0 = vadd.f32 %v622_v5, %v610_v3  ;;  %v638_v42 = vadd.f32 %v626_v29, %v614_v8 }
 0x1ac   :  { %v648_v59 = vpop.permute.xlu1 %647  ;;  %v1334_v17 = vpop.permute.xlu0 %591 }
 0x1ad   :  { %v681_v13 = vsel %vm361_vm8, %v648_v59, 0.0 }
 0x1ae   :  { %v1338_v55 = vadd.f32 %v681_v13, %v633_v16  ;;  %v715_v13 = vand.u32 2147483647, %v1319_v63 }
 0x1b0   :  { %v660_v18 = vpop.permute.xlu1 %659  ;;  %v656_v50 = vpop.permute.xlu0 %655 }
 0x1b1   :  { %v687_v28 = vsel %vm361_vm8, %v660_v18, 0.0  ;;  %v685_v23 = vsel %vm361_vm8, %v656_v50, 0.0 }
 0x1b2   :  { %v1345_v11 = vadd.f32 %v687_v28, %v639_v19  ;;  %v1347_v10 = vadd.f32 %v685_v23, %v637_v22 }
 0x1b4   :  { %v662_v32 = vpop.permute.xlu0 %661  ;;  %v1351_v35 = vpop.permute.xlu1 %593 }
 0x1b5   :  { %v688_v20 = vsel %vm361_vm8, %v662_v32, 0.0 }
 0x1b6   :  { %v700_v41 = vadd.f32 %v688_v20, %v640_v27 }
 0x1b8   :  { %v650_v44 = vpop.permute.xlu0 %649  ;;  %v658_v47 = vpop.permute.xlu1 %657  ;;  %v724_v19 = vand.u32 2147483647, %v700_v41  ;;  %v719_v41 = vand.u32 2147483647, %v1325_v7 }
 0x1b9   :  { %v682_v48 = vsel %vm361_vm8, %v650_v44, 0.0  ;;  %v686_v45 = vsel %vm361_vm8, %v658_v47, 0.0 }
 0x1ba   :  { %v694_v21 = vadd.f32 %v682_v48, %v634_v0  ;;  %v1359_v37 = vadd.f32 %v686_v45, %v638_v42 }
 0x1bc   :  { %v1361_v46 = vpop.permute.xlu0 %663  ;;  %v378_v38 = vpop.permute.xlu1 %377  ;;  %v718_v0 = vand.u32 2147483647, %v694_v21 }
 0x1bd   :  { %v412_v52 = vsel %vm361_vm8, %v378_v38, 0.0 }
 0x1c0   :  { %v390_v53 = vpop.permute.xlu0 %389  ;;  %v386_v54 = vpop.permute.xlu1 %385 }
 0x1c1   :  { %v416_v60 = vsel %vm361_vm8, %v386_v54, 0.0  ;;  %v418_v38 = vsel %vm361_vm8, %v390_v53, 0.0 }
 0x1c4   :  { %v434_v57 = vpop.permute.xlu0 %433  ;;  %v430_v34 = vpop.permute.xlu1 %429 }
 0x1c5   :  { %v464_v25 = vsel %vm1288_vm7, %v430_v34, 0.0  ;;  %v466_v28 = vsel %vm1288_vm7, %v434_v57, 0.0 }
 0x1c6   :  { %v476_v33 = vsub.f32 %v412_v52, %v464_v25  ;;  %v722_v25 = vand.u32 2147483647, %v1359_v37  ;;  %v617_v37 = vsel %vm1288_vm7, %v1334_v17, 0.0 }
 0x1c8   :  { %v704_v58 = vand.u32 2147483647, %v476_v33  ;;  %v376_v39 = vpop.permute.xlu0 %375  ;;  %v438_v30 = vpop.permute.xlu1 %437 }
 0x1c9   :  { %v468_v2 = vsel %vm1288_vm7, %v438_v30, 0.0  ;;  %v411_v61 = vsel %vm361_vm8, %v376_v39, 0.0 }
 0x1ca   :  { %v728_v43 = vadd.f32 %v716_v36, %v704_v58  ;;  %v480_v6 = vsub.f32 %v416_v60, %v468_v2 }
 0x1cc   :  { %v708_v31 = vand.u32 2147483647, %v480_v6  ;;  %v384_v26 = vpop.permute.xlu0 %383  ;;  %v394_v14 = vpop.permute.xlu1 %393 }
 0x1cd   :  { %v420_v16 = vsel %vm361_vm8, %v394_v14, 0.0  ;;  %v415_v23 = vsel %vm361_vm8, %v384_v26, 0.0 }
 0x1ce   :  { %v732_v56 = vadd.f32 %v720_v9, %v708_v31  ;;  %v717_v9 = vand.u32 2147483647, %v1338_v55  ;;  %v689_v31 = vsel %vm361_vm8, %v1361_v46, 0.0  ;;  %v721_v46 = vand.u32 2147483647, %v1347_v10 }
 0x1d0   :  { %v740_v15 = vmax.f32 %v728_v43, %v732_v56  ;;  %v428_v8 = vpop.permute.xlu0 %427  ;;  %v446_v3 = vpop.permute.xlu1 %445  ;;  %v629_v43 = vmul.f32 2.0, %v1091_v62 }
 0x1d1   :  { %v463_v4 = vsel %vm1288_vm7, %v428_v8, 0.0  ;;  %v472_v59 = vsel %vm1288_vm7, %v446_v3, 0.0 }
 0x1d2   :  { %v475_v12 = vsub.f32 %v411_v61, %v463_v4  ;;  %v484_v49 = vsub.f32 %v420_v16, %v472_v59  ;;  %v641_v55 = vadd.f32 %v629_v43, %v617_v37  ;;  %v723_v4 = vand.u32 2147483647, %v1345_v11 }
 0x1d3   :  { %v630_v59 = vmul.f32 2.0, %v1113_v1 }
 0x1d4   :  { %v703_v18 = vand.u32 2147483647, %v475_v12  ;;  %v712_v22 = vand.u32 2147483647, %v484_v49  ;;  %v436_v40 = vpop.permute.xlu0 %435  ;;  %v382_v50 = vpop.permute.xlu1 %381  ;;  %v618_v12 = vsel %vm1288_vm7, %v1351_v35, 0.0  ;;  %v701_v49 = vadd.f32 %v689_v31, %v641_v55 }
 0x1d5   :  { %v467_v27 = vsel %vm1288_vm7, %v436_v40, 0.0  ;;  %v414_v5 = vsel %vm361_vm8, %v382_v50, 0.0 }
 0x1d6   :  { %v727_v29 = vadd.f32 %v715_v13, %v703_v18  ;;  %v736_v32 = vadd.f32 %v724_v19, %v712_v22  ;;  %v479_v63 = vsub.f32 %v415_v23, %v467_v27  ;;  %v478_v20 = vsub.f32 %v414_v5, %v466_v28 }
 0x1d7   :  { %v642_v23 = vadd.f32 %v630_v59, %v618_v12  ;;  %v725_v27 = vand.u32 2147483647, %v701_v49 }
 0x1d8   :  { %v1389_v42 = vsub.f32 %v736_v32, %v740_v15  ;;  %v707_v44 = vand.u32 2147483647, %v479_v63  ;;  %v706_v47 = vand.u32 2147483647, %v478_v20  ;;  %v380_v48 = vpop.permute.xlu0 %379  ;;  %v442_v45 = vpop.permute.xlu1 %441 }
 0x1d9   :  { %v470_v54 = vsel %vm1288_vm7, %v442_v45, 0.0  ;;  %v413_v53 = vsel %vm361_vm8, %v380_v48, 0.0 }
 0x1da   :  { %v731_v57 = vadd.f32 %v719_v41, %v707_v44  ;;  %v1395_v34 = vadd.f32 %v718_v0, %v706_v47  ;;  %v482_v52 = vsub.f32 %v418_v38, %v470_v54  ;;  %v748_v1 = vand.u32 2147483647, %v1389_v42 }
 0x1dc   :  { %v739_v7 = vmax.f32 %v727_v29, %v731_v57  ;;  %v710_v21 = vand.u32 2147483647, %v482_v52  ;;  %v392_v33 = vpop.permute.xlu0 %391  ;;  %v398_v36 = vpop.permute.xlu1 %397  ;;  %v753_v45 = vsel %vm751_vm9, %v748_v1, 0.0 }
 0x1dd   :  { %v419_v15 = vsel %vm361_vm8, %v392_v33, 0.0  ;;  %v422_v20 = vsel %vm361_vm8, %v398_v36, 0.0 }
 0x1de   :  { %v734_v58 = vadd.f32 %v722_v25, %v710_v21 }
 0x1e0   :  { %v742_v39 = vmax.f32 %v1395_v34, %v734_v58  ;;  %v432_v30 = vpop.permute.xlu0 %431  ;;  %v388_v60 = vpop.permute.xlu1 %387 }
 0x1e1   :  { %v465_v2 = vsel %vm1288_vm7, %v432_v30, 0.0  ;;  %v417_v62 = vsel %vm361_vm8, %v388_v60, 0.0 }
 0x1e2   :  { %v477_v6 = vsub.f32 %v413_v53, %v465_v2 }
 0x1e4   :  { %v705_v26 = vand.u32 2147483647, %v477_v6  ;;  %v444_v14 = vpop.permute.xlu0 %443  ;;  %v440_v56 = vpop.permute.xlu1 %439 }
 0x1e5   :  { %v471_v8 = vsel %vm1288_vm7, %v444_v14, 0.0  ;;  %v469_v17 = vsel %vm1288_vm7, %v440_v56, 0.0 }
 0x1e6   :  { %v729_v3 = vadd.f32 %v717_v9, %v705_v26  ;;  %v483_v61 = vsub.f32 %v419_v15, %v471_v8  ;;  %v481_v16 = vsub.f32 %v417_v62, %v469_v17 }
 0x1e8   :  { %v711_v13 = vand.u32 2147483647, %v483_v61  ;;  %v709_v19 = vand.u32 2147483647, %v481_v16  ;;  %v448_v18 = vpop.permute.xlu0 %447  ;;  %v396_v22 = vpop.permute.xlu1 %395 }
 0x1e9   :  { %v473_v40 = vsel %vm1288_vm7, %v448_v18, 0.0  ;;  %v421_v50 = vsel %vm361_vm8, %v396_v22, 0.0 }
 0x1ea   :  { %v735_v10 = vadd.f32 %v723_v4, %v711_v13  ;;  %v733_v28 = vadd.f32 %v721_v46, %v709_v19  ;;  %v485_v11 = vsub.f32 %v421_v50, %v473_v40 }
 0x1ec   :  { %v743_v35 = vsub.f32 %v735_v10, %v739_v7  ;;  %v741_v5 = vmax.f32 %v729_v3, %v733_v28  ;;  %v713_v29 = vand.u32 2147483647, %v485_v11  ;;  %v450_v32 = vpop.permute.xlu0 %449  ;;  %v666_v63 = vpop.permute.xlu1 %665 }
 0x1ed   :  { %v474_v41 = vsel %vm1288_vm7, %v450_v32, 0.0  ;;  %v690_v0 = vsel %vm361_vm8, %v666_v63, 0.0 }
 0x1ee   :  { %v747_v44 = vand.u32 2147483647, %v743_v35  ;;  %v737_v47 = vadd.f32 %v725_v27, %v713_v29  ;;  %v486_v48 = vsub.f32 %v422_v20, %v474_v41  ;;  %v702_v42 = vadd.f32 %v690_v0, %v642_v23 }
 0x1f0   :  { %v745_v38 = vsub.f32 %v737_v47, %v741_v5  ;;  %v714_v54 = vand.u32 2147483647, %v486_v48  ;;  %v726_v57 = vand.u32 2147483647, %v702_v42  ;;  %v752_v34 = vsel %vm751_vm9, %v747_v44, 0.0 }
 0x1f1   :  { %v754_v52 = vadd.f32 %v753_v45, %v752_v34 }
 0x1f2   :  { %v738_v25 = vadd.f32 %v726_v57, %v714_v54  ;;  %v749_v7 = vand.u32 2147483647, %v745_v38 }
 0x1f4   :  { %v746_v21 = vsub.f32 %v738_v25, %v742_v39  ;;  %v755_v24 = vsel %vm751_vm9, %v749_v7, 0.0 }
 0x1f5   :  { %v756_v33 = vadd.f32 %v755_v24, %v754_v52 }
 0x1f6   :  { %v750_v51 = vand.u32 2147483647, %v746_v21 }
 0x1f8   :  { %v757_v36 = vsel %vm751_vm9, %v750_v51, 0.0 }
 0x1f9   :  { %v758_v58 = vadd.f32 %v757_v36, %v756_v33 }
 0x1fb   :  { %759 = vadd.xlane.f32.xlu0 %v758_v58 }
 0x288   :  { %v760_v30 = vpop.xlane.xlu0 %759 }
 0x289   :  { %v761_v60 = vrot.slane %v760_v30, 4 }
 0x28b   :  { %v762_v53 = vadd.f32 %v761_v60, %v760_v30 }
 0x28d   :  { %v763_v2 = vrot.slane %v762_v53, 2 }
 0x28f   :  { %v764_v43 = vadd.f32 %v763_v2, %v762_v53 }
 0x291   :  { %v765_v6 = vrot.slane %v764_v43, 1 }
 0x293   :  { %v766_v37 = vadd.f32 %v765_v6, %v764_v43 }
 0x295   :  { %791 = vpush %v766_v37 }
 0x2c6   :  { %s792_s27 = spop %791 }
 0x2c7   :  { %769 = sst [smem:[#allocation8]] %s792_s27 }
 0x2c8   :  { %830 = shalt.err (!%p827_p2)
}
 0x2c9   :  { %s864_s8 = smov [#allocation8]  }
 0x2ca   :  { %777 = dma.smem_to_hbm %s864_s8, 16, %s1455_s3, [#allocation4]  }
 0x2cb   :  { %835 = dma.done.wait [#allocation4], 16  }
 0x2cc   :  { %836 = vsyncadd [#allocation4], 4294967280 }
 0x2cd   :  { %781 = sfence }
 0x2ce   :  { %782 = vsyncpa [#allocation3], 1 }
 0x2cf   :  { %783 = vsyncpa [#allocation6], 1 }
 0x2d0   :  { %784 = vsyncpa [#allocation4], 1 }

</bundles_post_ra>
